<compile_context>
chip_gen: v7x
topology: tpu7x:2x2x1
jax: 0.10.0
libtpu: 0.0.40
codegen_flags: <defaults>
</compile_context>

<pallas_src>
import functools

import jax
import jax.numpy as jnp
from jax import lax
from jax.experimental import pallas as pl
from jax.experimental.pallas import tpu as pltpu


def _round_up(x, m):
    return ((x + m - 1) // m) * m


# ----------------------------------------------------------------------------
# Fused kernel: multi-head sparse attention + KG fill + text project + pred MLP
# ----------------------------------------------------------------------------
def _kedd4dp_kernel(hs_ref, hkg_ref, htxt_ref, kge_ref,
                    w1_ref, wkge_ref, wp1_ref, wp2_ref, bias_ref,
                    o_ref, *,
                    heads, k, struct_dim, kge_dim, text_dim, pred_hidden,
                    out_pad, w2_off, wh_off, wt_off,
                    p1s_off, p1k_off, p1t_off):
    x = hs_ref[...]                                   # (Bt, struct_dim)
    kge = kge_ref[...]                                # (N_kge, kge_dim)
    n_kge = kge.shape[0]
    bt = x.shape[0]

    # packed bias rows (static slices of one small VMEM slab)
    b1 = bias_ref[0:1, 0:heads * struct_dim]
    b2 = bias_ref[1:2, 0:heads * kge_dim]
    bh = bias_ref[2:3, 0:kge_dim]
    btx = bias_ref[3:4, 0:kge_dim]
    bp1 = bias_ref[4:5, 0:pred_hidden]
    bp2 = bias_ref[5:6, 0:out_pad]

    # ---- span_encoding layer 1 for ALL heads: one lane-stacked matmul -------
    h1 = jnp.dot(x, w1_ref[...], preferred_element_type=jnp.float32) + b1
    h1 = jnp.maximum(h1, 0.0)                         # (Bt, heads*struct_dim)

    # ---- layer 2: dense per-head row blocks (no block-diag zeros), ----------
    #      heads stacked along rows so the score matmul is fused.
    sp_list = []
    for h in range(heads):
        h1_h = h1[:, h * struct_dim:(h + 1) * struct_dim]
        w2_h = wkge_ref[w2_off + h * struct_dim:
                        w2_off + (h + 1) * struct_dim, :]
        b2_h = b2[:, h * kge_dim:(h + 1) * kge_dim]
        sp_list.append(jnp.dot(h1_h, w2_h,
                               preferred_element_type=jnp.float32) + b2_h)
    sp_all = jnp.concatenate(sp_list, axis=0)         # (heads*Bt, kge_dim)

    # ---- ONE fused score matmul for all heads (contract kge's last axis) ----
    dot = lax.dot_general(sp_all, kge, (((1,), (1,)), ((), ())),
                          preferred_element_type=jnp.float32)  # (heads*Bt, N)

    # ---- single top-k pass for all heads (ties -> lowest index, = lax.top_k)
    col = lax.broadcasted_iota(jnp.int32, dot.shape, 1)
    neg_inf = jnp.float32(-jnp.inf)
    selected = jnp.zeros(dot.shape, dtype=jnp.bool_)
    m_first = None
    for it in range(k):
        masked = jnp.where(selected, neg_inf, dot)
        m = jnp.max(masked, axis=1, keepdims=True)
        if it == 0:
            m_first = m                               # row max (top-1), reused
        cand = jnp.where(masked == m, col, n_kge)
        first = jnp.min(cand, axis=1, keepdims=True)
        selected = selected | (col == first)

    # torch: topmem = exp(topk); topmem = softmax(topmem)
    # exp is monotone and the row max is always selected, so the softmax max
    # over the selected exp(dot) values is exp(m_first) -> no extra reduction.
    # NOTE: as in the reference, dot >~ 88 overflows exp() -> inf/NaN weights.
    e = jnp.exp(dot)
    emax = jnp.exp(m_first)
    w = jnp.where(selected, jnp.exp(e - emax), 0.0)
    w = w / jnp.sum(w, axis=1, keepdims=True)

    # weighted sum of selected kge rows (zeros elsewhere)   (heads*Bt, kge_dim)
    value_all = jnp.dot(w, kge, preferred_element_type=jnp.float32)

    # fold the head concat + output Linear:
    #   hstack(heads) @ Wh == sum_h value_h @ Wh[h*kge:(h+1)*kge, :]
    sparse_kg = jnp.zeros((bt, kge_dim), jnp.float32)
    for h in range(heads):
        v_h = value_all[h * bt:(h + 1) * bt, :]
        wh_h = wkge_ref[wh_off + h * kge_dim:wh_off + (h + 1) * kge_dim, :]
        sparse_kg = sparse_kg + jnp.dot(v_h, wh_h,
                                        preferred_element_type=jnp.float32)
    sparse_kg = sparse_kg + bh

    # ---- fill rows with no KG embedding (exact == 0 match, as in reference) -
    h_kg_in = hkg_ref[...]
    nokge = jnp.all(h_kg_in == 0.0, axis=1, keepdims=True)
    h_kg = jnp.where(nokge, sparse_kg, h_kg_in)

    # ---- text projection ------------------------------------------------------
    wt_blk = wkge_ref[wt_off:wt_off + text_dim, :]
    h_text = jnp.dot(htxt_ref[...], wt_blk,
                     preferred_element_type=jnp.float32) + btx

    # ---- pred head: concat(hs, h_kg, h_text) @ Wp1 decomposed per row block -
    z = (jnp.dot(x, wp1_ref[p1s_off:p1s_off + struct_dim, :],
                 preferred_element_type=jnp.float32)
         + jnp.dot(h_kg, wp1_ref[p1k_off:p1k_off + kge_dim, :],
                   preferred_element_type=jnp.float32)
         + jnp.dot(h_text, wp1_ref[p1t_off:p1t_off + kge_dim, :],
                   preferred_element_type=jnp.float32)
         + bp1)
    z = jnp.maximum(z, 0.0)
    o_ref[...] = (jnp.dot(z, wp2_ref[...],
                          preferred_element_type=jnp.float32) + bp2)


# ----------------------------------------------------------------------------
# Wrapper: batch-tiled pallas_call
# ----------------------------------------------------------------------------
def kedd4dp_forward(params, drug, *, block_b=8):
    h_struct = drug["structure"].astype(jnp.float32)   # (B, struct_dim)
    h_kg = drug["kg"].astype(jnp.float32)               # (B, kge_dim)
    h_text = drug["text"].astype(jnp.float32)           # (B, text_dim)
    B = h_struct.shape[0]

    struct_dim = params["struct_dim"]
    kge_dim = params["kge_dim"]
    text_dim = params["text_dim"]
    heads = params["heads"]
    k = params["k"]
    pred_hidden = params["pred_hidden"]
    out_dim = params["out_dim"]
    out_pad = params["out_pad"]
    kge = params["kge_emb"]
    n_kge = kge.shape[0]
    assert 1 <= k <= n_kge, "sparse-attention k must be in [1, n_kge]"
    assert block_b % 8 == 0, "batch tile must be a multiple of 8 sublanes"

    # pad batch up to a multiple of the tile (extra rows sliced off at the end)
    b_pad = _round_up(B, block_b)
    if b_pad != B:
        pad = ((0, b_pad - B), (0, 0))
        h_struct = jnp.pad(h_struct, pad)
        h_kg = jnp.pad(h_kg, pad)
        h_text = jnp.pad(h_text, pad)
    grid = (b_pad // block_b,)

    def row_spec(d):
        return pl.BlockSpec((block_b, d), lambda i: (i, 0))

    def const_spec(arr):
        return pl.BlockSpec(arr.shape, lambda i: (0, 0))

    kern = functools.partial(
        _kedd4dp_kernel,
        heads=heads, k=k, struct_dim=struct_dim, kge_dim=kge_dim,
        text_dim=text_dim, pred_hidden=pred_hidden, out_pad=out_pad,
        w2_off=params["w2_off"], wh_off=params["wh_off"],
        wt_off=params["wt_off"], p1s_off=params["p1s_off"],
        p1k_off=params["p1k_off"], p1t_off=params["p1t_off"])

    weights = (kge, params["w1_stack"], params["wkge_slab"],
               params["wp1_slab"], params["wp2_pad"], params["bias_pack"])

    # advisory cost estimate for the XLA scheduler
    flops = 2 * b_pad * (struct_dim * heads * struct_dim
                         + heads * struct_dim * kge_dim
                         + 2 * heads * kge_dim * n_kge
                         + heads * kge_dim * kge_dim
                         + text_dim * kge_dim
                         + (struct_dim + 2 * kge_dim) * pred_hidden
                         + pred_hidden * out_pad)
    transcendentals = 3 * b_pad * heads * n_kge
    bytes_accessed = (sum(int(a.size) * 4 for a in weights)
                      + 4 * b_pad * (struct_dim + kge_dim + text_dim + out_pad))

    # scoped-VMEM budget: resident weights + double-buffered tiles + temporaries
    resident = sum(int(a.size) * 4 for a in weights)
    act = 2 * 4 * block_b * (struct_dim + kge_dim + text_dim + out_pad)
    temps = 4 * heads * block_b * (8 * n_kge + 4 * kge_dim)
    vmem_limit = int(max(16 << 20, min(100 << 20,
                                       resident + act + temps + (4 << 20))))

    out = pl.pallas_call(
        kern,
        out_shape=jax.ShapeDtypeStruct((b_pad, out_pad), jnp.float32),
        grid=grid,
        in_specs=[row_spec(struct_dim), row_spec(kge_dim), row_spec(text_dim),
                  const_spec(kge), const_spec(params["w1_stack"]),
                  const_spec(params["wkge_slab"]),
                  const_spec(params["wp1_slab"]),
                  const_spec(params["wp2_pad"]),
                  const_spec(params["bias_pack"])],
        out_specs=row_spec(out_pad),
        compiler_params=pltpu.CompilerParams(
            dimension_semantics=("parallel",),
            vmem_limit_bytes=vmem_limit),
        cost_estimate=pl.CostEstimate(flops=int(flops),
                                      transcendentals=int(transcendentals),
                                      bytes_accessed=int(bytes_accessed)),
    )(h_struct, h_kg, h_text, *weights)

    return out[:B, :out_dim]


# ----------------------------------------------------------------------------
# Pure-JAX reference (mirrors the PyTorch forward) for a correctness check.
# ----------------------------------------------------------------------------
def kedd4dp_reference(params, drug):
    hs = drug["structure"].astype(jnp.float32)
    hkg = drug["kg"].astype(jnp.float32)
    ht = drug["text"].astype(jnp.float32)
    r = params["_ref"]
    kge = params["kge_emb"]
    k = params["k"]

    head_out = []
    for h in range(params["heads"]):
        z = jnp.maximum(hs @ r["head_w1"][h] + r["head_b1"][h], 0.0)
        spanned = z @ r["head_w2"][h] + r["head_b2"][h]
        dot = spanned @ kge.T
        topv, topi = lax.top_k(dot, k)
        wts = jax.nn.softmax(jnp.exp(topv), axis=1)
        head_out.append(jnp.einsum("bk,bkd->bd", wts, kge[topi]))
    sparse_kg = jnp.concatenate(head_out, axis=1) @ r["wh"] + r["bh"]

    nokge = jnp.all(hkg == 0.0, axis=1, keepdims=True)
    hkg2 = jnp.where(nokge, sparse_kg, hkg)
    htp = ht @ r["wt"] + r["bt"]
    hcat = jnp.concatenate([hs, hkg2, htp], axis=1)
    wp1 = jnp.concatenate([r["wp1_s"], r["wp1_k"], r["wp1_t"]], axis=0)
    z = jnp.maximum(hcat @ wp1 + r["bp1"], 0.0)
    return z @ r["wp2"] + r["bp2"]


# ----------------------------------------------------------------------------
# Deterministic parameter construction (+ kernel-friendly packing).
# ----------------------------------------------------------------------------
def make_params(key, *, struct_dim, kge_dim, text_dim, n_kge, heads, k,
                pred_hidden, out_dim):
    ks = iter(jax.random.split(key, 64))

    def w(shape, scale=0.1):
        return (scale * jax.random.normal(next(ks), shape)).astype(jnp.float32)

    # per-head SparseAttention.span_encoding: Linear(struct, struct) -> ReLU ->
    #                                         Linear(struct, kge_dim)
    head_w1, head_b1, head_w2, head_b2 = [], [], [], []
    for _ in range(heads):
        head_w1.append(w((struct_dim, struct_dim)))
        head_b1.append(w((1, struct_dim)))
        head_w2.append(w((struct_dim, kge_dim)))
        head_b2.append(w((1, kge_dim)))

    # MultiHeadSparseAttention output linear
    wh = w((heads * kge_dim, kge_dim)); bh = w((1, kge_dim))
    # text_project
    wt = w((text_dim, kge_dim)); bt = w((1, kge_dim))
    # pred_head MLP split into per-block weights (concat decomposition)
    wp1_s = w((struct_dim, pred_hidden))
    wp1_k = w((kge_dim, pred_hidden))
    wp1_t = w((kge_dim, pred_hidden))
    bp1 = w((1, pred_hidden))
    wp2 = w((pred_hidden, out_dim)); bp2 = w((1, out_dim))

    # ---------------- kernel packing ----------------
    # lane-stacked W1 / b1 (all heads in one matmul)
    w1_stack = jnp.concatenate(head_w1, axis=1)       # (struct, heads*struct)
    b1_stack = jnp.concatenate(head_b1, axis=1)
    b2_stack = jnp.concatenate(head_b2, axis=1)

    # slab of every weight whose output dim is kge_dim (dense per-head W2,
    # per-head row blocks of Wh, Wt), section starts 8-row aligned
    w2_rows = jnp.concatenate(head_w2, axis=0)        # (heads*struct, kge)
    w2_off = 0
    wh_off = _round_up(heads * struct_dim, 8)
    wt_off = wh_off + _round_up(heads * kge_dim, 8)
    slab_rows = wt_off + _round_up(text_dim, 8)
    wkge_slab = jnp.zeros((slab_rows, kge_dim), jnp.float32)
    wkge_slab = wkge_slab.at[0:heads * struct_dim].set(w2_rows)
    wkge_slab = wkge_slab.at[wh_off:wh_off + heads * kge_dim].set(wh)
    wkge_slab = wkge_slab.at[wt_off:wt_off + text_dim].set(wt)

    # pred-head first-layer slab (struct / kg / text row blocks)
    p1s_off = 0
    p1k_off = _round_up(struct_dim, 8)
    p1t_off = p1k_off + _round_up(kge_dim, 8)
    wp1_rows = p1t_off + _round_up(kge_dim, 8)
    wp1_slab = jnp.zeros((wp1_rows, pred_hidden), jnp.float32)
    wp1_slab = wp1_slab.at[p1s_off:p1s_off + struct_dim].set(wp1_s)
    wp1_slab = wp1_slab.at[p1k_off:p1k_off + kge_dim].set(wp1_k)
    wp1_slab = wp1_slab.at[p1t_off:p1t_off + kge_dim].set(wp1_t)

    # lane-dense output: pad out_dim up to a full 128-lane vreg
    out_pad = max(128, _round_up(out_dim, 128))
    wp2_pad = jnp.zeros((pred_hidden, out_pad), jnp.float32)
    wp2_pad = wp2_pad.at[:, :out_dim].set(wp2)

    # pack all bias rows into one small slab (fewer tiny padded DMAs)
    bias_w = max(heads * struct_dim, heads * kge_dim, kge_dim,
                 pred_hidden, out_pad)
    bias_pack = jnp.zeros((8, bias_w), jnp.float32)
    bias_pack = bias_pack.at[0, :heads * struct_dim].set(b1_stack[0])
    bias_pack = bias_pack.at[1, :heads * kge_dim].set(b2_stack[0])
    bias_pack = bias_pack.at[2, :kge_dim].set(bh[0])
    bias_pack = bias_pack.at[3, :kge_dim].set(bt[0])
    bias_pack = bias_pack.at[4, :pred_hidden].set(bp1[0])
    bias_pack = bias_pack.at[5, :out_dim].set(bp2[0])

    return {
        "k": k, "heads": heads, "out_dim": out_dim, "out_pad": out_pad,
        "struct_dim": struct_dim, "kge_dim": kge_dim, "text_dim": text_dim,
        "pred_hidden": pred_hidden,
        # kge dict: keys 'D0'..'D{n_kge-1}', sorted & vstacked -> one matrix
        "kge_emb": w((n_kge, kge_dim), 1.0),
        "w1_stack": w1_stack,
        "wkge_slab": wkge_slab, "w2_off": w2_off, "wh_off": wh_off,
        "wt_off": wt_off,
        "wp1_slab": wp1_slab, "p1s_off": p1s_off, "p1k_off": p1k_off,
        "p1t_off": p1t_off,
        "wp2_pad": wp2_pad, "bias_pack": bias_pack,
        # unpacked copies used only by the pure-JAX reference
        "_ref": {"head_w1": head_w1, "head_b1": head_b1,
                 "head_w2": head_w2, "head_b2": head_b2,
                 "wh": wh, "bh": bh, "wt": wt, "bt": bt,
                 "wp1_s": wp1_s, "wp1_k": wp1_k, "wp1_t": wp1_t,
                 "bp1": bp1, "wp2": wp2, "bp2": bp2},
    }


if __name__ == "__main__":
    B = 12               # not a multiple of the tile -> exercises padding
    STRUCT_DIM = 32      # drug_structure_encoder.output_dim
    KGE_DIM = 16         # kge embedding dim == projection_dim
    TEXT_DIM = 32
    N_KGE = 16           # number of drug KGE entries
    HEADS = 2
    K = 3                # sparse_attention top-k
    PRED_HIDDEN = 32
    OUT_DIM = 2
    BLOCK_B = 8          # batch tile (grid of 2 steps for B=12 -> B_pad=16)

    root = jax.random.PRNGKey(0)
    kp, kd = jax.random.split(root)
    params = make_params(kp, struct_dim=STRUCT_DIM, kge_dim=KGE_DIM,
                         text_dim=TEXT_DIM, n_kge=N_KGE, heads=HEADS, k=K,
                         pred_hidden=PRED_HIDDEN, out_dim=OUT_DIM)

    k1, k2, k3 = jax.random.split(kd, 3)
    h_structure = jax.random.normal(k1, (B, STRUCT_DIM), jnp.float32)
    h_kg = jax.random.normal(k2, (B, KGE_DIM), jnp.float32)
    # some rows have no KG embedding -> exercise the sparse-attention fill
    h_kg = h_kg.at[1, :].set(0.0).at[3, :].set(0.0).at[10, :].set(0.0)
    h_text = jax.random.normal(k3, (B, TEXT_DIM), jnp.float32)

    drug = {"structure": h_structure, "kg": h_kg, "text": h_text}

    out = kedd4dp_forward(params, drug, block_b=BLOCK_B)
    jax.block_until_ready(out)
    assert out.shape == (B, OUT_DIM) and out.dtype == jnp.float32

    ref = kedd4dp_reference(params, drug)
    assert jnp.allclose(out, ref, atol=1e-4, rtol=1e-4), (out, ref)

    print("KERNEL_OK")
</pallas_src>

<mosaic_0001>
module attributes {stable_mosaic.version = 11 : i64} {
  func.func @_kedd4dp_kernel(%arg0: i32, %arg1: memref<8x32xf32, #tpu.memory_space<vmem>>, %arg2: memref<8x16xf32, #tpu.memory_space<vmem>>, %arg3: memref<8x32xf32, #tpu.memory_space<vmem>>, %arg4: memref<16x16xf32, #tpu.memory_space<vmem>>, %arg5: memref<32x64xf32, #tpu.memory_space<vmem>>, %arg6: memref<128x16xf32, #tpu.memory_space<vmem>>, %arg7: memref<64x32xf32, #tpu.memory_space<vmem>>, %arg8: memref<32x128xf32, #tpu.memory_space<vmem>>, %arg9: memref<8x128xf32, #tpu.memory_space<vmem>>, %arg10: memref<8x128xf32, #tpu.memory_space<vmem>>) attributes {dimension_semantics = [#tpu.dimension_semantics<parallel>], iteration_bounds = array<i64: 2>, scalar_prefetch = 0 : i64, scratch_operands = 0 : i64, tpu.core_type = #tpu.core_type<tc>, window_params = [{transform_indices = @transform_0, window_bounds = array<i64: 8, 32>}, {transform_indices = @transform_1, window_bounds = array<i64: 8, 16>}, {transform_indices = @transform_2, window_bounds = array<i64: 8, 32>}, {pipeline_mode = #tpu.pipeline_mode<synchronous>, transform_indices = @transform_3, window_bounds = array<i64: 16, 16>}, {pipeline_mode = #tpu.pipeline_mode<synchronous>, transform_indices = @transform_4, window_bounds = array<i64: 32, 64>}, {pipeline_mode = #tpu.pipeline_mode<synchronous>, transform_indices = @transform_5, window_bounds = array<i64: 128, 16>}, {pipeline_mode = #tpu.pipeline_mode<synchronous>, transform_indices = @transform_6, window_bounds = array<i64: 64, 32>}, {pipeline_mode = #tpu.pipeline_mode<synchronous>, transform_indices = @transform_7, window_bounds = array<i64: 32, 128>}, {pipeline_mode = #tpu.pipeline_mode<synchronous>, transform_indices = @transform_8, window_bounds = array<i64: 8, 128>}, {transform_indices = @transform_9, window_bounds = array<i64: 8, 128>}]} {
    %c0 = arith.constant 0 : index
    %c0_0 = arith.constant 0 : index
    %0 = vector.load %arg1[%c0, %c0_0] : memref<8x32xf32, #tpu.memory_space<vmem>>, vector<8x32xf32>
    %c0_1 = arith.constant 0 : index
    %c0_2 = arith.constant 0 : index
    %1 = vector.load %arg4[%c0_1, %c0_2] : memref<16x16xf32, #tpu.memory_space<vmem>>, vector<16x16xf32>
    %c0_3 = arith.constant 0 : index
    %c0_4 = arith.constant 0 : index
    %2 = vector.load %arg9[%c0_3, %c0_4] : memref<8x128xf32, #tpu.memory_space<vmem>>, vector<1x64xf32>
    %c1 = arith.constant 1 : index
    %c0_5 = arith.constant 0 : index
    %3 = vector.load %arg9[%c1, %c0_5] : memref<8x128xf32, #tpu.memory_space<vmem>>, vector<1x32xf32>
    %c2 = arith.constant 2 : index
    %c0_6 = arith.constant 0 : index
    %4 = vector.load %arg9[%c2, %c0_6] : memref<8x128xf32, #tpu.memory_space<vmem>>, vector<1x16xf32>
    %c3 = arith.constant 3 : index
    %c0_7 = arith.constant 0 : index
    %5 = vector.load %arg9[%c3, %c0_7] : memref<8x128xf32, #tpu.memory_space<vmem>>, vector<1x16xf32>
    %c4 = arith.constant 4 : index
    %c0_8 = arith.constant 0 : index
    %6 = vector.load %arg9[%c4, %c0_8] : memref<8x128xf32, #tpu.memory_space<vmem>>, vector<1x32xf32>
    %c5 = arith.constant 5 : index
    %c0_9 = arith.constant 0 : index
    %7 = vector.load %arg9[%c5, %c0_9] : memref<8x128xf32, #tpu.memory_space<vmem>>, vector<1x128xf32>
    %c0_10 = arith.constant 0 : index
    %c0_11 = arith.constant 0 : index
    %8 = vector.load %arg5[%c0_10, %c0_11] : memref<32x64xf32, #tpu.memory_space<vmem>>, vector<32x64xf32>
    %cst = arith.constant dense<0.000000e+00> : vector<8x64xf32>
    %9 = tpu.matmul %0, %8, %cst {dimension_numbers = #tpu.dot_dimension_numbers<[1], [0], [0], [1], [0, 0, 1, 1], [], []>} : vector<8x32xf32>, vector<32x64xf32>, vector<8x64xf32> -> vector<8x64xf32>
    %10 = vector.broadcast %2 : vector<1x64xf32> to vector<8x64xf32>
    %11 = arith.addf %9, %10 : vector<8x64xf32>
    %cst_12 = arith.constant 0.000000e+00 : f32
    %12 = vector.broadcast %cst_12 : f32 to vector<8x64xf32>
    %13 = arith.maximumf %11, %12 : vector<8x64xf32>
    %14 = vector.extract_strided_slice %13 {offsets = [0, 0], sizes = [8, 32], strides = [1, 1]} : vector<8x64xf32> to vector<8x32xf32>
    %c0_13 = arith.constant 0 : index
    %c0_14 = arith.constant 0 : index
    %15 = vector.load %arg6[%c0_13, %c0_14] : memref<128x16xf32, #tpu.memory_space<vmem>>, vector<32x16xf32>
    %16 = vector.extract_strided_slice %3 {offsets = [0, 0], sizes = [1, 16], strides = [1, 1]} : vector<1x32xf32> to vector<1x16xf32>
    %cst_15 = arith.constant dense<0.000000e+00> : vector<8x16xf32>
    %17 = tpu.matmul %14, %15, %cst_15 {dimension_numbers = #tpu.dot_dimension_numbers<[1], [0], [0], [1], [0, 0, 1, 1], [], []>} : vector<8x32xf32>, vector<32x16xf32>, vector<8x16xf32> -> vector<8x16xf32>
    %18 = vector.broadcast %16 : vector<1x16xf32> to vector<8x16xf32>
    %19 = arith.addf %17, %18 : vector<8x16xf32>
    %20 = vector.extract_strided_slice %13 {offsets = [0, 32], sizes = [8, 32], strides = [1, 1]} : vector<8x64xf32> to vector<8x32xf32>
    %c32 = arith.constant 32 : index
    %c0_16 = arith.constant 0 : index
    %21 = vector.load %arg6[%c32, %c0_16] : memref<128x16xf32, #tpu.memory_space<vmem>>, vector<32x16xf32>
    %22 = vector.extract_strided_slice %3 {offsets = [0, 16], sizes = [1, 16], strides = [1, 1]} : vector<1x32xf32> to vector<1x16xf32>
    %cst_17 = arith.constant dense<0.000000e+00> : vector<8x16xf32>
    %23 = tpu.matmul %20, %21, %cst_17 {dimension_numbers = #tpu.dot_dimension_numbers<[1], [0], [0], [1], [0, 0, 1, 1], [], []>} : vector<8x32xf32>, vector<32x16xf32>, vector<8x16xf32> -> vector<8x16xf32>
    %24 = vector.broadcast %22 : vector<1x16xf32> to vector<8x16xf32>
    %25 = arith.addf %23, %24 : vector<8x16xf32>
    %26 = tpu.concatenate %19, %25 in 0 : vector<8x16xf32>, vector<8x16xf32> -> vector<16x16xf32>
    %cst_18 = arith.constant dense<0.000000e+00> : vector<16x16xf32>
    %27 = tpu.matmul %26, %1, %cst_18 {dimension_numbers = #tpu.dot_dimension_numbers<[1], [1], [0], [0], [0, 0, 1, 0], [], []>} : vector<16x16xf32>, vector<16x16xf32>, vector<16x16xf32> -> vector<16x16xf32>
    %28 = tpu.iota {dimensions = array<i32: 1>} : vector<16x16xi32>
    %false = arith.constant false
    %29 = vector.broadcast %false : i1 to vector<16x16xi1>
    %cst_19 = arith.constant 0xFF800000 : f32
    %30 = vector.broadcast %cst_19 : f32 to vector<16x16xf32>
    %31 = arith.select %29, %30, %27 : vector<16x16xi1>, vector<16x16xf32>
    %cst_20 = arith.constant dense<0xFF800000> : vector<16xf32>
    %32 = vector.multi_reduction <maximumf>, %31, %cst_20 [1] : vector<16x16xf32> to vector<16xf32>
    %33 = vector.shape_cast %32 : vector<16xf32> to vector<16x1xf32>
    %34 = vector.broadcast %33 : vector<16x1xf32> to vector<16x16xf32>
    %35 = arith.cmpf oeq, %31, %34 : vector<16x16xf32>
    %c16_i32 = arith.constant 16 : i32
    %36 = vector.broadcast %c16_i32 : i32 to vector<16x16xi32>
    %37 = arith.select %35, %28, %36 : vector<16x16xi1>, vector<16x16xi32>
    %cst_21 = arith.constant dense<2147483647> : vector<16xi32>
    %38 = vector.multi_reduction <minsi>, %37, %cst_21 [1] : vector<16x16xi32> to vector<16xi32>
    %39 = vector.shape_cast %38 : vector<16xi32> to vector<16x1xi32>
    %40 = vector.broadcast %39 : vector<16x1xi32> to vector<16x16xi32>
    %41 = arith.cmpi eq, %28, %40 : vector<16x16xi32>
    %42 = arith.ori %29, %41 : vector<16x16xi1>
    %cst_22 = arith.constant 0xFF800000 : f32
    %43 = vector.broadcast %cst_22 : f32 to vector<16x16xf32>
    %44 = arith.select %42, %43, %27 : vector<16x16xi1>, vector<16x16xf32>
    %cst_23 = arith.constant dense<0xFF800000> : vector<16xf32>
    %45 = vector.multi_reduction <maximumf>, %44, %cst_23 [1] : vector<16x16xf32> to vector<16xf32>
    %46 = vector.shape_cast %45 : vector<16xf32> to vector<16x1xf32>
    %47 = vector.broadcast %46 : vector<16x1xf32> to vector<16x16xf32>
    %48 = arith.cmpf oeq, %44, %47 : vector<16x16xf32>
    %c16_i32_24 = arith.constant 16 : i32
    %49 = vector.broadcast %c16_i32_24 : i32 to vector<16x16xi32>
    %50 = arith.select %48, %28, %49 : vector<16x16xi1>, vector<16x16xi32>
    %cst_25 = arith.constant dense<2147483647> : vector<16xi32>
    %51 = vector.multi_reduction <minsi>, %50, %cst_25 [1] : vector<16x16xi32> to vector<16xi32>
    %52 = vector.shape_cast %51 : vector<16xi32> to vector<16x1xi32>
    %53 = vector.broadcast %52 : vector<16x1xi32> to vector<16x16xi32>
    %54 = arith.cmpi eq, %28, %53 : vector<16x16xi32>
    %55 = arith.ori %42, %54 : vector<16x16xi1>
    %cst_26 = arith.constant 0xFF800000 : f32
    %56 = vector.broadcast %cst_26 : f32 to vector<16x16xf32>
    %57 = arith.select %55, %56, %27 : vector<16x16xi1>, vector<16x16xf32>
    %cst_27 = arith.constant dense<0xFF800000> : vector<16xf32>
    %58 = vector.multi_reduction <maximumf>, %57, %cst_27 [1] : vector<16x16xf32> to vector<16xf32>
    %59 = vector.shape_cast %58 : vector<16xf32> to vector<16x1xf32>
    %60 = vector.broadcast %59 : vector<16x1xf32> to vector<16x16xf32>
    %61 = arith.cmpf oeq, %57, %60 : vector<16x16xf32>
    %c16_i32_28 = arith.constant 16 : i32
    %62 = vector.broadcast %c16_i32_28 : i32 to vector<16x16xi32>
    %63 = arith.select %61, %28, %62 : vector<16x16xi1>, vector<16x16xi32>
    %cst_29 = arith.constant dense<2147483647> : vector<16xi32>
    %64 = vector.multi_reduction <minsi>, %63, %cst_29 [1] : vector<16x16xi32> to vector<16xi32>
    %65 = vector.shape_cast %64 : vector<16xi32> to vector<16x1xi32>
    %66 = vector.broadcast %65 : vector<16x1xi32> to vector<16x16xi32>
    %67 = arith.cmpi eq, %28, %66 : vector<16x16xi32>
    %68 = arith.ori %55, %67 : vector<16x16xi1>
    %69 = math.exp %27 : vector<16x16xf32>
    %70 = math.exp %33 : vector<16x1xf32>
    %71 = vector.broadcast %70 : vector<16x1xf32> to vector<16x16xf32>
    %72 = arith.subf %69, %71 : vector<16x16xf32>
    %73 = math.exp %72 : vector<16x16xf32>
    %cst_30 = arith.constant 0.000000e+00 : f32
    %74 = vector.broadcast %cst_30 : f32 to vector<16x16xf32>
    %75 = arith.select %68, %73, %74 : vector<16x16xi1>, vector<16x16xf32>
    %cst_31 = arith.constant dense<0.000000e+00> : vector<16xf32>
    %76 = vector.multi_reduction <add>, %75, %cst_31 [1] : vector<16x16xf32> to vector<16xf32>
    %77 = vector.shape_cast %76 : vector<16xf32> to vector<16x1xf32>
    %78 = vector.broadcast %77 : vector<16x1xf32> to vector<16x16xf32>
    %79 = arith.divf %75, %78 : vector<16x16xf32>
    %cst_32 = arith.constant dense<0.000000e+00> : vector<16x16xf32>
    %80 = tpu.matmul %79, %1, %cst_32 {dimension_numbers = #tpu.dot_dimension_numbers<[1], [0], [0], [1], [0, 0, 1, 1], [], []>} : vector<16x16xf32>, vector<16x16xf32>, vector<16x16xf32> -> vector<16x16xf32>
    %cst_33 = arith.constant 0.000000e+00 : f32
    %81 = vector.broadcast %cst_33 : f32 to vector<8x16xf32>
    %82 = vector.extract_strided_slice %80 {offsets = [0, 0], sizes = [8, 16], strides = [1, 1]} : vector<16x16xf32> to vector<8x16xf32>
    %c64 = arith.constant 64 : index
    %c0_34 = arith.constant 0 : index
    %83 = vector.load %arg6[%c64, %c0_34] : memref<128x16xf32, #tpu.memory_space<vmem>>, vector<16x16xf32>
    %cst_35 = arith.constant dense<0.000000e+00> : vector<8x16xf32>
    %84 = tpu.matmul %82, %83, %cst_35 {dimension_numbers = #tpu.dot_dimension_numbers<[1], [0], [0], [1], [0, 0, 1, 1], [], []>} : vector<8x16xf32>, vector<16x16xf32>, vector<8x16xf32> -> vector<8x16xf32>
    %85 = arith.addf %81, %84 : vector<8x16xf32>
    %86 = vector.extract_strided_slice %80 {offsets = [8, 0], sizes = [8, 16], strides = [1, 1]} : vector<16x16xf32> to vector<8x16xf32>
    %c80 = arith.constant 80 : index
    %c0_36 = arith.constant 0 : index
    %87 = vector.load %arg6[%c80, %c0_36] : memref<128x16xf32, #tpu.memory_space<vmem>>, vector<16x16xf32>
    %cst_37 = arith.constant dense<0.000000e+00> : vector<8x16xf32>
    %88 = tpu.matmul %86, %87, %cst_37 {dimension_numbers = #tpu.dot_dimension_numbers<[1], [0], [0], [1], [0, 0, 1, 1], [], []>} : vector<8x16xf32>, vector<16x16xf32>, vector<8x16xf32> -> vector<8x16xf32>
    %89 = arith.addf %85, %88 : vector<8x16xf32>
    %90 = vector.broadcast %4 : vector<1x16xf32> to vector<8x16xf32>
    %91 = arith.addf %89, %90 : vector<8x16xf32>
    %c0_38 = arith.constant 0 : index
    %c0_39 = arith.constant 0 : index
    %92 = vector.load %arg2[%c0_38, %c0_39] : memref<8x16xf32, #tpu.memory_space<vmem>>, vector<8x16xf32>
    %cst_40 = arith.constant 0.000000e+00 : f32
    %93 = vector.broadcast %cst_40 : f32 to vector<8x16xf32>
    %94 = arith.cmpf oeq, %92, %93 : vector<8x16xf32>
    %cst_41 = arith.constant 1.000000e+00 : f32
    %cst_42 = arith.constant 0.000000e+00 : f32
    %95 = vector.broadcast %cst_41 : f32 to vector<8x16xf32>
    %96 = vector.broadcast %cst_42 : f32 to vector<8x16xf32>
    %97 = arith.select %94, %95, %96 : vector<8x16xi1>, vector<8x16xf32>
    %cst_43 = arith.constant dense<0x7F800000> : vector<8xf32>
    %98 = vector.multi_reduction <minimumf>, %97, %cst_43 [1] : vector<8x16xf32> to vector<8xf32>
    %cst_44 = arith.constant 0.000000e+00 : f32
    %99 = vector.broadcast %cst_44 : f32 to vector<8xf32>
    %100 = arith.cmpf ogt, %98, %99 : vector<8xf32>
    %101 = vector.shape_cast %100 : vector<8xi1> to vector<8x1xi1>
    %102 = vector.shape_cast %101 : vector<8x1xi1> to vector<8x1xi1>
    %103 = vector.broadcast %102 : vector<8x1xi1> to vector<8x16xi1>
    %104 = arith.select %103, %91, %92 : vector<8x16xi1>, vector<8x16xf32>
    %c96 = arith.constant 96 : index
    %c0_45 = arith.constant 0 : index
    %105 = vector.load %arg6[%c96, %c0_45] : memref<128x16xf32, #tpu.memory_space<vmem>>, vector<32x16xf32>
    %c0_46 = arith.constant 0 : index
    %c0_47 = arith.constant 0 : index
    %106 = vector.load %arg3[%c0_46, %c0_47] : memref<8x32xf32, #tpu.memory_space<vmem>>, vector<8x32xf32>
    %cst_48 = arith.constant dense<0.000000e+00> : vector<8x16xf32>
    %107 = tpu.matmul %106, %105, %cst_48 {dimension_numbers = #tpu.dot_dimension_numbers<[1], [0], [0], [1], [0, 0, 1, 1], [], []>} : vector<8x32xf32>, vector<32x16xf32>, vector<8x16xf32> -> vector<8x16xf32>
    %108 = vector.broadcast %5 : vector<1x16xf32> to vector<8x16xf32>
    %109 = arith.addf %107, %108 : vector<8x16xf32>
    %c0_49 = arith.constant 0 : index
    %c0_50 = arith.constant 0 : index
    %110 = vector.load %arg7[%c0_49, %c0_50] : memref<64x32xf32, #tpu.memory_space<vmem>>, vector<32x32xf32>
    %cst_51 = arith.constant dense<0.000000e+00> : vector<8x32xf32>
    %111 = tpu.matmul %0, %110, %cst_51 {dimension_numbers = #tpu.dot_dimension_numbers<[1], [0], [0], [1], [0, 0, 1, 1], [], []>} : vector<8x32xf32>, vector<32x32xf32>, vector<8x32xf32> -> vector<8x32xf32>
    %c32_52 = arith.constant 32 : index
    %c0_53 = arith.constant 0 : index
    %112 = vector.load %arg7[%c32_52, %c0_53] : memref<64x32xf32, #tpu.memory_space<vmem>>, vector<16x32xf32>
    %cst_54 = arith.constant dense<0.000000e+00> : vector<8x32xf32>
    %113 = tpu.matmul %104, %112, %cst_54 {dimension_numbers = #tpu.dot_dimension_numbers<[1], [0], [0], [1], [0, 0, 1, 1], [], []>} : vector<8x16xf32>, vector<16x32xf32>, vector<8x32xf32> -> vector<8x32xf32>
    %114 = arith.addf %111, %113 : vector<8x32xf32>
    %c48 = arith.constant 48 : index
    %c0_55 = arith.constant 0 : index
    %115 = vector.load %arg7[%c48, %c0_55] : memref<64x32xf32, #tpu.memory_space<vmem>>, vector<16x32xf32>
    %cst_56 = arith.constant dense<0.000000e+00> : vector<8x32xf32>
    %116 = tpu.matmul %109, %115, %cst_56 {dimension_numbers = #tpu.dot_dimension_numbers<[1], [0], [0], [1], [0, 0, 1, 1], [], []>} : vector<8x16xf32>, vector<16x32xf32>, vector<8x32xf32> -> vector<8x32xf32>
    %117 = arith.addf %114, %116 : vector<8x32xf32>
    %118 = vector.broadcast %6 : vector<1x32xf32> to vector<8x32xf32>
    %119 = arith.addf %117, %118 : vector<8x32xf32>
    %cst_57 = arith.constant 0.000000e+00 : f32
    %120 = vector.broadcast %cst_57 : f32 to vector<8x32xf32>
    %121 = arith.maximumf %119, %120 : vector<8x32xf32>
    %c0_58 = arith.constant 0 : index
    %c0_59 = arith.constant 0 : index
    %122 = vector.load %arg8[%c0_58, %c0_59] : memref<32x128xf32, #tpu.memory_space<vmem>>, vector<32x128xf32>
    %cst_60 = arith.constant dense<0.000000e+00> : vector<8x128xf32>
    %123 = tpu.matmul %121, %122, %cst_60 {dimension_numbers = #tpu.dot_dimension_numbers<[1], [0], [0], [1], [0, 0, 1, 1], [], []>} : vector<8x32xf32>, vector<32x128xf32>, vector<8x128xf32> -> vector<8x128xf32>
    %124 = vector.broadcast %7 : vector<1x128xf32> to vector<8x128xf32>
    %125 = arith.addf %123, %124 : vector<8x128xf32>
    %c0_61 = arith.constant 0 : index
    %c0_62 = arith.constant 0 : index
    %126 = vector.load %arg10[%c0_61, %c0_62] : memref<8x128xf32, #tpu.memory_space<vmem>>, vector<8x128xf32>
    tpu.vector_store %arg10[%c0_61, %c0_62], %125 {strides = array<i32>} : memref<8x128xf32, #tpu.memory_space<vmem>>, vector<8x128xf32>,
    return
  }
  func.func @transform_0(%arg0: i32) -> (i32, i32) {
    %c0_i32 = arith.constant 0 : i32
    %c0_i32_0 = arith.constant 0 : i32
    return %arg0, %c0_i32 : i32, i32
  }
  func.func @transform_1(%arg0: i32) -> (i32, i32) {
    %c0_i32 = arith.constant 0 : i32
    %c0_i32_0 = arith.constant 0 : i32
    return %arg0, %c0_i32 : i32, i32
  }
  func.func @transform_2(%arg0: i32) -> (i32, i32) {
    %c0_i32 = arith.constant 0 : i32
    %c0_i32_0 = arith.constant 0 : i32
    return %arg0, %c0_i32 : i32, i32
  }
  func.func @transform_3(%arg0: i32) -> (i32, i32) {
    %c0_i32 = arith.constant 0 : i32
    %c0_i32_0 = arith.constant 0 : i32
    %c0_i32_1 = arith.constant 0 : i32
    return %c0_i32, %c0_i32_0 : i32, i32
  }
  func.func @transform_4(%arg0: i32) -> (i32, i32) {
    %c0_i32 = arith.constant 0 : i32
    %c0_i32_0 = arith.constant 0 : i32
    %c0_i32_1 = arith.constant 0 : i32
    return %c0_i32, %c0_i32_0 : i32, i32
  }
  func.func @transform_5(%arg0: i32) -> (i32, i32) {
    %c0_i32 = arith.constant 0 : i32
    %c0_i32_0 = arith.constant 0 : i32
    %c0_i32_1 = arith.constant 0 : i32
    return %c0_i32, %c0_i32_0 : i32, i32
  }
  func.func @transform_6(%arg0: i32) -> (i32, i32) {
    %c0_i32 = arith.constant 0 : i32
    %c0_i32_0 = arith.constant 0 : i32
    %c0_i32_1 = arith.constant 0 : i32
    return %c0_i32, %c0_i32_0 : i32, i32
  }
  func.func @transform_7(%arg0: i32) -> (i32, i32) {
    %c0_i32 = arith.constant 0 : i32
    %c0_i32_0 = arith.constant 0 : i32
    %c0_i32_1 = arith.constant 0 : i32
    return %c0_i32, %c0_i32_0 : i32, i32
  }
  func.func @transform_8(%arg0: i32) -> (i32, i32) {
    %c0_i32 = arith.constant 0 : i32
    %c0_i32_0 = arith.constant 0 : i32
    %c0_i32_1 = arith.constant 0 : i32
    return %c0_i32, %c0_i32_0 : i32, i32
  }
  func.func @transform_9(%arg0: i32) -> (i32, i32) {
    %c0_i32 = arith.constant 0 : i32
    %c0_i32_0 = arith.constant 0 : i32
    return %arg0, %c0_i32 : i32, i32
  }
}

</mosaic_0001>

<bundles_post_ra>
// kernel: tpu_custom_call.1
= control target key start
LH: loop header
LB: loop body
LE: loop exit
PB: predicated region body
PF: predicated region fallthrough
CT: control target
= control target key end

     0   :  { %14 = vsyncpa [#allocation3], 0  ;;  %s2403_s0 = inlined_call_operand.vmem [shape: f32[16,32], index: 0, kind: input, shape index: {}]   ;;  %s2404_s1 = inlined_call_operand.vmem [shape: f32[16,16], index: 1, kind: input, shape index: {}]   ;;  %s2405_s2 = inlined_call_operand.vmem [shape: f32[16,32], index: 2, kind: input, shape index: {}]   ;;  %s2406_s3 = inlined_call_operand.vmem [shape: f32[16,16], index: 3, kind: input, shape index: {}]   ;;  %s2407_s4 = inlined_call_operand.vmem [shape: f32[32,64], index: 4, kind: input, shape index: {}]   ;;  %s2408_s5 = inlined_call_operand.vmem [shape: f32[128,16], index: 5, kind: input, shape index: {}]   ;;  %s2409_s6 = inlined_call_operand.vmem [shape: f32[64,32], index: 6, kind: input, shape index: {}]   ;;  %s2410_s7 = inlined_call_operand.vmem [shape: f32[32,128], index: 7, kind: input, shape index: {}]   ;;  %s2411_s8 = inlined_call_operand.vmem [shape: f32[8,128], index: 8, kind: input, shape index: {}]   ;;  %s2412_s9 = inlined_call_operand.hbm [shape: f32[16,128], index: 9, kind: output, shape index: {}]  }
   0x1   :  { %16 = vsyncpa [#allocation3 + $0x1], 0  ;;  %s2035_s30 = smov 0   ;;  %s2037_s10 = smov 0  }
   0x2   :  { %s2039_s11 = smov 0   ;;  %s2041_s12 = smov 0  }
   0x3 LB: > { %s2056_s13 = sadd.s32 4294967295, %s1977_s12   ;;  %s1605_s14 = sadd.s32 4294967294, %s1977_s12   ;;  %s1977_s12 = sphi %s2041_s12, %s2422_s12   ;;  %s1973_s11 = sphi %s2039_s11, %s2421_s11   ;;  %s1969_s10 = sphi %s2037_s10, %s2420_s10   ;;  %s1965_s30 = sphi %s2035_s30, %s2419_s30  }
   0x4   : > { %s2060_s15 = sadd.s32 1, %s1977_s12   ;;  %s233_s16 = sadd.s32 1, %s1973_s11 }
   0x5   : > { %s230_s17 = ssub.s32 %s1977_s12, %s2060_s15  ;;  %p243_p0 = scmp.ne.s32.totalorder %s1973_s11, %s1969_s10 }
   0x6   : > { %p231_p1 = scmp.eq.s32.totalorder %s230_s17, 0  ;;  %p244_p2 = scmp.eq.s32.totalorder %s2056_s13, 1 }
   0x7   : > { %p249_p3 = scmp.ne.s32.totalorder %s1969_s10, %s1965_s30  ;;  %p250_p4 = scmp.eq.s32.totalorder %s1605_s14, 1 }
   0x8   : > { %s2071_s18 = scalar_select %p231_p1, %s1973_s11, %s233_s16  }
   0x9   : > { %p2073_p5 = por %p244_p2, %p243_p0  ;;  %p2077_p6 = por %p250_p4, %p249_p3 }
   0xa   : > { %p1608_p7 = scmp.ge.s32.totalorder %s1977_s12, 1  ;;  %p307_p8 = scmp.lt.s32.totalorder %s1977_s12, 3 }
   0xc   : > { %p308_p9 = pnand %p1608_p7, %p307_p8 }
   0xd   : > { %v371_v0 = vld [vmem:[%s2407_s4] sm:$0xff] (!%p308_p9)  ;;  %v372_v1 = vld [vmem:[%s2407_s4 + $0x8] sm:$0xff] (!%p308_p9)  ;;  %v373_v2 = vld [vmem:[%s2407_s4 + $0x10] sm:$0xff] (!%p308_p9)  ;;  %v1979_v3 = vmov (!%p308_p9), 0.0|0.0   ;;  %vm1980_vm0 = vmmov (!%p308_p9), 0   ;;  %v1981_v6 = vmov (!%p308_p9), 0.0   ;;  %v705_v42 = vlaneseq (!%p308_p9) }
   0xe   : > { %311 = sbr.rel (%p308_p9) target bundleno = 3158 (0xc56), region = 56  ;;  %1797 = vmatprep.subr.bf16.mxu0 (!%p308_p9), %v1979_v3  ;;  %v1798_v4 = vpack.c.bf16 (!%p308_p9), %v372_v1, %v371_v0  ;;  %v374_v5 = vld [vmem:[%s2407_s4 + $0x18] sm:$0xff] (!%p308_p9)  ;;  %1697 = vmatprep.mubr.msk.f32.mxu0 (!%p308_p9), %vm1980_vm0, %v1981_v6  ;;  %p350_p10 = scmp.lt.s32.totalorder (!%p308_p9), %s2056_s13, 1  ;;  %v454_v7 = vld [vmem:[%s2408_s5] sm:$0xff] (!%p308_p9)  ;;  %v455_v8 = vld [vmem:[%s2408_s5 + $0x8] sm:$0xff] (!%p308_p9)  ;;  %vm379_vm1 = vcmask (!%p308_p9), 261120  }
   0xf   : > { %1803 = vmatprep.subr.bf16.mxu1 (!%p308_p9), %v1979_v3  ;;  %v1804_v9 = vpack.c.bf16 (!%p308_p9), %v455_v8, %v454_v7  ;;  %1708 = vmatprep.mubr.msk.f32.mxu1 (!%p308_p9), %vm1980_vm0, %v1981_v6  ;;  %v1801_v10 = vpack.c.bf16 (!%p308_p9), %v374_v5, %v373_v2  ;;  %v456_v12 = vld [vmem:[%s2408_s5 + $0x10] sm:$0xff] (!%p308_p9)  ;;  %v457_v13 = vld [vmem:[%s2408_s5 + $0x18] sm:$0xff] (!%p308_p9)  ;;  %v535_v15 = vld [vmem:[%s2408_s5 + $0x20] sm:$0xff] (!%p308_p9)  ;;  %s1982_s29 = smov (!%p308_p9), 96   ;;  %s1983_s17 = smov (!%p308_p9), 112   ;;  %vm617_vm2 = vcmask (!%p308_p9), 130048  }
  0x10   : > { %1799 = vmatpush3.bf16.msra.mxu0 (!%p308_p9), %v1798_v4  ;;  %v1807_v14 = vpack.c.bf16 (!%p308_p9), %v457_v13, %v456_v12  ;;  %v536_v16 = vld [vmem:[%s2408_s5 + $0x28] sm:$0xff] (!%p308_p9)  ;;  %v537_v17 = vld [vmem:[%s2408_s5 + $0x30] sm:$0xff] (!%p308_p9)  ;;  %v538_v19 = vld [vmem:[%s2408_s5 + $0x38] sm:$0xff] (!%p308_p9)  ;;  %v2174_v44 = vand.u32 (!%p308_p9), 127, %v705_v42  ;;  %s347_s16 = sand.u32 (!%p308_p9), 1, %s1969_s10   ;;  %s1636_s24 = sshll.u32 (!%p308_p9), %s2056_s13, 7 }
  0x11   : > { %1800 = vmatprep.subr.bf16.mxu0 (!%p308_p9), %v1979_v3  ;;  %1805 = vmatpush3.bf16.msra.mxu1 (!%p308_p9), %v1804_v9  ;;  %v1810_v18 = vpack.c.bf16 (!%p308_p9), %v536_v16, %v535_v15  ;;  %v1813_v20 = vpack.c.bf16 (!%p308_p9), %v538_v19, %v537_v17  ;;  %v1613_v21 = vld [vmem:[%s2411_s8] ss:$0 sm:$0xff] (!%p308_p9)  ;;  %v1615_v26 = vld [vmem:[%s2411_s8 + $0x1] ss:$0 sm:$0xff] (!%p308_p9)  ;;  %v364_v28 = vld [vmem:[%s2406_s3 + $0x8] sm:$0xff] (!%p308_p9) }
  0x12   : > { %1806 = vmatprep.subr.bf16.mxu1 (!%p308_p9), %v1979_v3  ;;  %v363_v27 = vld [vmem:[%s2406_s3] sm:$0xff] (!%p308_p9)  ;;  %vm1816_vm3 = vmpackc.low (!%p308_p9), %vm617_vm2, %vm617_vm2 }
  0x13   : > { %v1815_v29 = vpack.c.bf16 (!%p308_p9), %v364_v28, %v363_v27 }
  0x14   : > { %1802 = vmatpush3.bf16.msra.mxu0 (!%p308_p9), %v1801_v10 }
  0x15   : > { %s351_s21 = scalar_select %p350_p10, %s2056_s13, 1  ;;  %1809 = vmatprep.subr.bf16.mxu0 %v1979_v3  ;;  %1808 = vmatpush3.bf16.msra.mxu1 %v1807_v14 }
  0x16   : > { %1817 = vmatprep.subr.msk.bf16.mxu1 %vm1816_vm3, %v1815_v29  ;;  %s1984_s13 = smov [#allocation2]  }
  0x17   : > { %s2110_s22 = sshll.u32 %s351_s21, 3 }
  0x18   : > { %s353_s25 = scalar_lea.vmem %s2403_s0, %s2110_s22 }
  0x19   : > { %v2117_v11 = vld [vmem:[%s353_s25] sm:$0xff]  ;;  %s357_s25 = scalar_lea.vmem %s2404_s1, %s2110_s22 }
  0x1a   : > { %1698 = vmatmul.mubr.msk.f32.vlgmr.msra.gmra.mrb[0].mxu0 %vm379_vm1, %v2117_v11 }
  0x1b   : > { %1719 = vmatprep.mubr.msk.f32.mxu0 %vm1980_vm0, %v1981_v6  ;;  %1811 = vmatpush3.bf16.msra.mxu0 %v1810_v18 }
  0x1c   : > { %1812 = vmatprep.subr.bf16.mxu0 %v1979_v3 }
  0x1f   : > { %1814 = vmatpush3.bf16.msra.mxu0 %v1813_v20 }
  0x20   : > { %1822 = vmatprep.subr.bf16.mxu0 %v1815_v29 }
  0xed   : > { %v449_v22 = vpop.f32.mrb[0].mxu0 }
  0xee   : > { %v450_v23 = vadd.f32 %v1613_v21, %v449_v22  ;;  %v1699_v24 = vpop.f32.mrb[1].mxu0 }
  0xf0   : > { %v453_v25 = vmax.f32 %v450_v23, 0.0 }
  0xf2   : > { %539 = vrot.lane.b32.xlu0 %v453_v25, %s1982_s29  ;;  %1709 = vmatmul.mubr.msk.f32.vlgmr.msra.gmra.mrb[0].mxu1 %vm379_vm1, %v453_v25  ;;  %s2361_s29 = scalar_lea.hbm %s2412_s9, %s1636_s24 }
  0xf3   : > { %1820 = vmatpush3.bf16.xpose.msk.msra.mxu1 %vm1816_vm3, %v1815_v29 }
  0xf4   : > { %1825 = vmatprep.subr.bf16.mxu1 %v1979_v3 }
  0xf6   : > { %542 = vrot.lane.b32.xlu0 %v1615_v26, %s1983_s17  ;;  %s1609_s17 = sshll.u32 %s347_s16, 3 }
 0x164   : > { %v540_v30 = vpop.permute.xlu0 %539 }
 0x165   : > { %1720 = vmatmul.mubr.msk.f32.vlgmr.msra.gmra.mrb[2].mxu0 %vm379_vm1, %v540_v30 }
 0x166   : > { %1824 = vmatpush3.bf16.msra.mxu0 %v1815_v29 }
 0x167   : > { %1828 = vmatprep.subr.bf16.mxu0 %v1979_v3 }
 0x168   : > { %v543_v34 = vpop.permute.xlu0 %542 }
 0x1c5   : > { %v531_v31 = vpop.f32.mrb[0].mxu1 }
 0x1c6   : > { %v532_v32 = vadd.f32 %v1615_v26, %v531_v31  ;;  %v1710_v33 = vpop.f32.mrb[1].mxu1 }
 0x1c8   : > { %1726 = vmatprep.mubr.msk.f32.mxu1 %vm617_vm2, %v532_v32 }
 0x238   : > { %v613_v35 = vpop.f32.mrb[2].mxu0 }
 0x239   : > { %v614_v36 = vadd.f32 %v613_v35, %v543_v34  ;;  %v1721_v37 = vpop.f32.mrb[3].mxu0 }
 0x23b   : > { %1727 = vmatmul.mubr.msk.f32.vlgmr.msra.gmra.mrb[2].mxu1 %vm617_vm2, %v614_v36 }
 0x23c   : > { %1740 = vmatprep.mubr.msk.f32.mxu1 %vm1980_vm0, %v1981_v6 }
 0x30e   : > { %v2165_v38 = vpop.f32.mrb[2].mxu1 }
 0x30f   : > { %v2167_v39 = vpop.f32.mrb[3].mxu1  ;;  %v710_v41 = vsel %vm617_vm2, %v2165_v38, -inf }
 0x310   : > { %v707_v40 = vsel %vm617_vm2, %v2167_v39, -inf  ;;  %v841_v43 = vmul.f32 1.442695, %v2167_v39 }
 0x311   : > { %708 = vmax.xlane.f32.xlu1 %v707_v40 }
 0x312   : > { %1899 = vpow2.f32 %v841_v43 }
 0x315   : > { %711 = vmax.xlane.f32.xlu1 %v710_v41 }
 0x31c   : > { %v2185_v56 = vpop.eup %1899 }
 0x39e   : > { %v709_v45 = vpop.xlane.xlu1 %708 }
 0x39f   : > { %vm713_vm4 = vcmp.eq.f32.partialorder %v2167_v39, %v709_v45  ;;  %v845_v46 = vmul.f32 1.442695, %v709_v45 }
 0x3a0   : > { %v715_v47 = vsel %vm713_vm4, %v2174_v44, 16 }
 0x3a1   : > { %1901 = vpow2.f32 %v845_v46  ;;  %v717_v48 = vsel %vm617_vm2, %v715_v47, 2147483647 }
 0x3a2   : > { %v2179_v49 = vpop.xlane.xlu1 %711  ;;  %v719_v50 = vshra.s32 %v717_v48, 16  ;;  %v718_v59 = vand.u32 65535, %v717_v48 }
 0x3a3   : > { %vm714_vm5 = vcmp.eq.f32.partialorder %v2165_v38, %v2179_v49 }
 0x3a4   : > { %v716_v51 = vsel %vm714_vm5, %v2174_v44, 16  ;;  %v721_v52 = vcvt.s32.f32 %v719_v50  ;;  %v720_v61 = vcvt.s32.f32 %v718_v59 }
 0x3a5   : > { %v732_v53 = vsel %vm617_vm2, %v716_v51, 2147483647 }
 0x3a6   : > { %722 = vmin.xlane.f32.xlu0 %v721_v52  ;;  %v734_v54 = vshra.s32 %v732_v53, 16  ;;  %v733_v62 = vand.u32 65535, %v732_v53 }
 0x3a8   : > { %v736_v55 = vcvt.s32.f32 %v734_v54  ;;  %v735_v1 = vcvt.s32.f32 %v733_v62 }
 0x3aa   : > { %737 = vmin.xlane.f32.xlu1 %v736_v55 }
 0x3ab   : > { %v2187_v57 = vpop.eup %1901 }
 0x3ac   : > { %v849_v58 = vsub.f32 %v2185_v56, %v2187_v57 }
 0x433   : > { %v723_v60 = vpop.xlane.xlu0 %722 }
 0x434   : > { %vm724_vm6 = vcmp.eq.f32.partialorder %v721_v52, %v723_v60  ;;  %v729_v4 = vcvt.f32.s32 %v723_v60 }
 0x435   : > { %v725_v63 = vsel %vm724_vm6, %v720_v61, inf }
 0x436   : > { %726 = vmin.xlane.f32.xlu1 %v725_v63  ;;  %v730_v7 = vshll.u32 %v729_v4, 16 }
 0x437   : > { %v738_v0 = vpop.xlane.xlu1 %737 }
 0x438   : > { %vm739_vm7 = vcmp.eq.f32.partialorder %v736_v55, %v738_v0  ;;  %v744_v8 = vcvt.f32.s32 %v738_v0 }
 0x439   : > { %v740_v2 = vsel %vm739_vm7, %v735_v1, inf }
 0x43a   : > { %741 = vmin.xlane.f32.xlu1 %v740_v2  ;;  %v745_v13 = vshll.u32 %v744_v8, 16 }
 0x4c3   : > { %v727_v5 = vpop.xlane.xlu1 %726 }
 0x4c4   : > { %v728_v9 = vcvt.f32.s32 %v727_v5 }
 0x4c6   : > { %v731_v10 = vadd.s32 %v730_v7, %v728_v9 }
 0x4c7   : > { %v742_v12 = vpop.xlane.xlu1 %741 }
 0x4c8   : > { %v743_v14 = vcvt.f32.s32 %v742_v12  ;;  %vm747_vm8 = vcmp.eq.s32.totalorder %v2174_v44, %v731_v10 }
 0x4c9   : > { %v749_v15 = vsel %vm747_vm8, -inf, %v2167_v39 }
 0x4ca   : > { %v746_v16 = vadd.s32 %v745_v13, %v743_v14  ;;  %v751_v17 = vsel %vm617_vm2, %v749_v15, -inf }
 0x4cb   : > { %752 = vmax.xlane.f32.xlu1 %v751_v17  ;;  %v847_v17 = vmul.f32 1.442695, %v2179_v49 }
 0x4cc   : > { %vm748_vm9 = vcmp.eq.s32.totalorder %v2174_v44, %v746_v16 }
 0x4cd   : > { %v750_v18 = vsel %vm748_vm9, -inf, %v2165_v38  ;;  %1903 = vpow2.f32 %v847_v17 }
 0x4ce   : > { %v754_v19 = vsel %vm617_vm2, %v750_v18, -inf }
 0x4cf   : > { %755 = vmax.xlane.f32.xlu1 %v754_v19 }
 0x4d7   : > { %v1904_v19 = vpop.eup %1903 }
 0x558   : > { %v753_v20 = vpop.xlane.xlu1 %752 }
 0x559   : > { %vm757_vm10 = vcmp.eq.f32.partialorder %v749_v15, %v753_v20 }
 0x55a   : > { %v759_v21 = vsel %vm757_vm10, %v2174_v44, 16 }
 0x55b   : > { %v761_v22 = vsel %vm617_vm2, %v759_v21, 2147483647 }
 0x55c   : > { %v756_v23 = vpop.xlane.xlu1 %755  ;;  %v763_v24 = vshra.s32 %v761_v22, 16  ;;  %v762_v30 = vand.u32 65535, %v761_v22  ;;  %v851_v22 = vmul.f32 1.442695, %v849_v58 }
 0x55d   : > { %vm758_vm11 = vcmp.eq.f32.partialorder %v750_v18, %v756_v23  ;;  %v843_v18 = vmul.f32 1.442695, %v2165_v38 }
 0x55e   : > { %v760_v25 = vsel %vm758_vm11, %v2174_v44, 16  ;;  %v765_v26 = vcvt.s32.f32 %v763_v24  ;;  %v764_v32 = vcvt.s32.f32 %v762_v30 }
 0x55f   : > { %v776_v27 = vsel %vm617_vm2, %v760_v25, 2147483647  ;;  %1905 = vpow2.f32 %v843_v18 }
 0x560   : > { %766 = vmin.xlane.f32.xlu1 %v765_v26  ;;  %v778_v28 = vshra.s32 %v776_v27, 16  ;;  %v777_v33 = vand.u32 65535, %v776_v27  ;;  %1907 = vpow2.f32 %v851_v22 }
 0x562   : > { %v780_v29 = vcvt.s32.f32 %v778_v28  ;;  %v779_v36 = vcvt.s32.f32 %v777_v33 }
 0x564   : > { %781 = vmin.xlane.f32.xlu1 %v780_v29 }
 0x569   : > { %v1906_v20 = vpop.eup %1905 }
 0x56a   : > { %v850_v21 = vsub.f32 %v1906_v20, %v1904_v19  ;;  %v1197_v20 = vld [vmem:[%s2409_s6 + $0x10] sm:$0xff] }
 0x56c   : > { %v853_v23 = vmul.f32 1.442695, %v850_v21  ;;  %v1198_v21 = vld [vmem:[%s2409_s6 + $0x18] sm:$0xff] }
 0x56e   : > { %1909 = vpow2.f32 %v853_v23  ;;  %v1627_v23 = vld [vmem:[%s2411_s8 + $0x3] ss:$0 sm:$0xff] }
 0x5ed   : > { %v767_v31 = vpop.xlane.xlu1 %766 }
 0x5ee   : > { %vm768_vm12 = vcmp.eq.f32.partialorder %v765_v26, %v767_v31  ;;  %v773_v40 = vcvt.f32.s32 %v767_v31  ;;  %v1908_v31 = vpop.eup %1907 }
 0x5ef   : > { %v769_v34 = vsel %vm768_vm12, %v764_v32, inf  ;;  %v1910_v32 = vpop.eup %1909 }
 0x5f0   : > { %770 = vmin.xlane.f32.xlu1 %v769_v34  ;;  %v774_v42 = vshll.u32 %v773_v40, 16 }
 0x5f1   : > { %v782_v35 = vpop.xlane.xlu1 %781 }
 0x5f2   : > { %vm783_vm13 = vcmp.eq.f32.partialorder %v780_v29, %v782_v35  ;;  %v788_v43 = vcvt.f32.s32 %v782_v35  ;;  %v950_v35 = vld [vmem:[%s2408_s5 + $0x50] sm:$0xff] }
 0x5f3   : > { %v784_v37 = vsel %vm783_vm13, %v779_v36, inf  ;;  %v951_v36 = vld [vmem:[%s2408_s5 + $0x58] sm:$0xff] }
 0x5f4   : > { %785 = vmin.xlane.f32.xlu0 %v784_v37  ;;  %v789_v48 = vshll.u32 %v788_v43, 16  ;;  %v1826_v37 = vpack.c.bf16 %v951_v36, %v950_v35  ;;  %v948_v43 = vld [vmem:[%s2408_s5 + $0x40] sm:$0xff] }
 0x5f6   : > { %1827 = vmatpush3.bf16.msra.mxu1 %v1826_v37  ;;  %v1633_v37 = vld [vmem:[%s2411_s8 + $0x5] ss:$0 sm:$0xff] }
 0x5f7   : > { %1831 = vmatprep.subr.bf16.mxu1 %v1979_v3 }
 0x67d   : > { %v771_v41 = vpop.xlane.xlu1 %770 }
 0x67e   : > { %v772_v45 = vcvt.f32.s32 %v771_v41 }
 0x680   : > { %v775_v46 = vadd.s32 %v774_v42, %v772_v45  ;;  %v949_v45 = vld [vmem:[%s2408_s5 + $0x48] sm:$0xff] }
 0x681   : > { %v786_v47 = vpop.xlane.xlu0 %785 }
 0x682   : > { %v787_v50 = vcvt.f32.s32 %v786_v47  ;;  %vm791_vm14 = vcmp.eq.s32.totalorder %v2174_v44, %v775_v46  ;;  %v1829_v47 = vpack.c.bf16 %v949_v45, %v948_v43 }
 0x683   : > { %vm2208_vm15 = vmor %vm747_vm8, %vm791_vm14 }
 0x684   : > { %v790_v52 = vadd.s32 %v789_v48, %v787_v50  ;;  %v795_v53 = vsel %vm2208_vm15, -inf, %v2167_v39  ;;  %v1103_v50 = vld [vmem:[%s357_s25] sm:$0xff]  ;;  %s361_s25 = scalar_lea.vmem %s2405_s2, %s2110_s22  ;;  %s1509_s22 = scalar_lea.sflag [#allocation3], %s347_s16 }
 0x685   : > { %v797_v54 = vsel %vm617_vm2, %v795_v53, -inf  ;;  %vm1104_vm13 = vcmp.eq.f32.partialorder %v1103_v50, 0.0 }
 0x686   : > { %798 = vmax.xlane.f32.xlu1 %v797_v54  ;;  %vm792_vm3 = vcmp.eq.s32.totalorder %v2174_v44, %v790_v52  ;;  %v1105_v51 = vsel %vm1104_vm13, 1.0, %v1981_v6  ;;  %v1114_v54 = vld [vmem:[%s2408_s5 + $0x68] sm:$0xff] }
 0x687   : > { %vm2219_vm4 = vmor %vm748_vm9, %vm792_vm3  ;;  %v1106_v52 = vsel %vm617_vm2, %v1105_v51, inf }
 0x688   : > { %v796_v59 = vsel %vm2219_vm4, -inf, %v2165_v38 }
 0x689   : > { %v800_v60 = vsel %vm617_vm2, %v796_v59, -inf }
 0x68a   : > { %801 = vmax.xlane.f32.xlu0 %v800_v60  ;;  %v1116_v60 = vld [vmem:[%s2408_s5 + $0x78] sm:$0xff] }
 0x713   : > { %v799_v61 = vpop.xlane.xlu1 %798 }
 0x714   : > { %vm803_vm5 = vcmp.eq.f32.partialorder %v795_v53, %v799_v61  ;;  %v1113_v53 = vld [vmem:[%s2408_s5 + $0x60] sm:$0xff] }
 0x715   : > { %v805_v39 = vsel %vm803_vm5, %v2174_v44, 16  ;;  %v1832_v55 = vpack.c.bf16 %v1114_v54, %v1113_v53 }
 0x716   : > { %v807_v62 = vsel %vm617_vm2, %v805_v39, 2147483647 }
 0x717   : > { %v802_v63 = vpop.xlane.xlu0 %801  ;;  %v809_v0 = vshra.s32 %v807_v62, 16  ;;  %v808_v8 = vand.u32 65535, %v807_v62 }
 0x718   : > { %vm804_vm6 = vcmp.eq.f32.partialorder %v796_v59, %v802_v63  ;;  %v1115_v59 = vld [vmem:[%s2408_s5 + $0x70] sm:$0xff]  ;;  %v1117_v63 = vld [vmem:[%s361_s25] sm:$0xff]  ;;  %s349_s25 = scalar_lea.vmem [#allocation2], %s1609_s17  ;;  %s1919_s17 = sshll.u32 %s1984_s13, 4  ;;  %s1920_s17 = int_to_ptr.vmem [resolvable:$false] %s1919_s17 }
 0x719   : > { %v806_v1 = vsel %vm804_vm6, %v2174_v44, 16  ;;  %v811_v2 = vcvt.s32.f32 %v809_v0  ;;  %v810_v10 = vcvt.s32.f32 %v808_v8  ;;  %v1835_v62 = vpack.c.bf16 %v1116_v60, %v1115_v59  ;;  %v1199_v0 = vld [vmem:[%s2409_s6 + $0x20] sm:$0xff]  ;;  %s1522_s26 = sshll.u32 %s349_s25, 4  ;;  %s1921_s21 = scalar_lea.vmem %s1920_s17, 256  ;;  %s2363_s26 = int_to_ptr.vmem [resolvable:$true] %s1522_s26 }
 0x71a   : > { %v822_v4 = vsel %vm617_vm2, %v806_v1, 2147483647  ;;  %v1200_v1 = vld [vmem:[%s2409_s6 + $0x28] sm:$0xff]  ;;  %s1915_s14 = scalar_lea.vmem %s2363_s26, 128  ;;  %p1922_p0 = scmp.lt.s32.totalorder %s2363_s26, %s1920_s17 }
 0x71b   : > { %812 = vmin.xlane.f32.xlu1 %v811_v2  ;;  %v824_v5 = vshra.s32 %v822_v4, 16  ;;  %v823_v12 = vand.u32 65535, %v822_v4  ;;  %v1344_v4 = vld [vmem:[%s2409_s6 + $0x30] sm:$0xff]  ;;  %p1916_p11 = scmp.ne.s32.totalorder %s2363_s26, %s1915_s14  ;;  %p1923_p1 = scmp.lt.s32.totalorder %s1921_s21, %s1915_s14 }
 0x71d   : > { %v826_v7 = vcvt.s32.f32 %v824_v5  ;;  %v825_v15 = vcvt.s32.f32 %v823_v12  ;;  %v1345_v5 = vld [vmem:[%s2409_s6 + $0x38] sm:$0xff]  ;;  %v1626_v12 = vld [vmem:[%s2411_s8 + $0x2] ss:$0 sm:$0xff]  ;;  %p1917_p12 = pnand %p1916_p11, %p2073_p5  ;;  %p1924_p2 = por %p1923_p1, %p1922_p0 }
 0x71f   : > { %827 = vmin.xlane.f32.xlu0 %v826_v7  ;;  %p1918_p13 = pneg %p1917_p12 }
 0x721   : > { %p1925_p3 = pnand %p1924_p2, %p1918_p13 }
 0x7a8   : > { %v813_v9 = vpop.xlane.xlu1 %812 }
 0x7a9   : > { %vm814_vm7 = vcmp.eq.f32.partialorder %v811_v2, %v813_v9  ;;  %v819_v24 = vcvt.f32.s32 %v813_v9  ;;  %v1838_v2 = vpack.c.bf16 %v1200_v1, %v1199_v0 }
 0x7aa   : > { %v815_v13 = vsel %vm814_vm7, %v810_v10, inf }
 0x7ab   : > { %816 = vmin.xlane.f32.xlu1 %v815_v13  ;;  %v820_v26 = vshll.u32 %v819_v24, 16  ;;  %v1844_v24 = vpack.c.bf16 %v1198_v21, %v1197_v20 }
 0x7ac   : > { %v828_v14 = vpop.xlane.xlu0 %827 }
 0x7ad   : > { %vm829_vm8 = vcmp.eq.f32.partialorder %v826_v7, %v828_v14  ;;  %v834_v27 = vcvt.f32.s32 %v828_v14  ;;  %v1847_v7 = vpack.c.bf16 %v1345_v5, %v1344_v4  ;;  %v1195_v14 = vld [vmem:[%s2409_s6] sm:$0xff] }
 0x7ae   : > { %v830_v16 = vsel %vm829_vm8, %v825_v15, inf  ;;  %v1196_v15 = vld [vmem:[%s2409_s6 + $0x8] sm:$0xff] }
 0x7af   : > { %831 = vmin.xlane.f32.xlu0 %v830_v16  ;;  %v835_v38 = vshll.u32 %v834_v27, 16  ;;  %v1841_v19 = vpack.c.bf16 %v1196_v15, %v1195_v14 }
 0x838   : > { %v817_v25 = vpop.xlane.xlu1 %816 }
 0x839   : > { %v818_v28 = vcvt.f32.s32 %v817_v25 }
 0x83b   : > { %v821_v49 = vadd.s32 %v820_v26, %v818_v28  ;;  %v1426_v28 = vld [vmem:[%s2410_s7] sm:$0xff] }
 0x83c   : > { %v832_v29 = vpop.xlane.xlu0 %831 }
 0x83d   : > { %v833_v30 = vcvt.f32.s32 %v832_v29  ;;  %vm837_vm9 = vcmp.eq.s32.totalorder %v2174_v44, %v821_v49  ;;  %v1427_v49 = vld [vmem:[%s2410_s7 + $0x8] sm:$0xff] }
 0x83e   : > { %vm839_vm10 = vmor %vm2208_vm15, %vm837_vm9  ;;  %v1850_v29 = vpack.c.bf16 %v1427_v49, %v1426_v28 }
 0x83f   : > { %v836_v56 = vadd.s32 %v835_v38, %v833_v30  ;;  %v855_v57 = vsel %vm839_vm10, %v1908_v31, 0.0  ;;  %v1428_v38 = vld [vmem:[%s2410_s7 + $0x10] sm:$0xff] }
 0x840   : > { %v857_v58 = vsel %vm617_vm2, %v855_v57, 0.0 }
 0x841   : > { %858 = vadd.xlane.f32.xlu1 %v857_v58  ;;  %vm838_vm11 = vcmp.eq.s32.totalorder %v2174_v44, %v836_v56 }
 0x842   : > { %vm840_vm12 = vmor %vm2219_vm4, %vm838_vm11 }
 0x843   : > { %v856_v33 = vsel %vm840_vm12, %v1910_v32, 0.0 }
 0x844   : > { %v860_v34 = vsel %vm617_vm2, %v856_v33, 0.0 }
 0x845   : > { %861 = vadd.xlane.f32.xlu0 %v860_v34  ;;  %1107 = vmin.xlane.f32.xlu1 %v1106_v52 }
 0x8ce   : > { %v859_v44 = vpop.xlane.xlu1 %858 }
 0x8cf   : > { %1911 = vrcp.f32 %v859_v44 }
 0x8d2   : > { %v862_v40 = vpop.xlane.xlu0 %861  ;;  %v1108_v9 = vpop.xlane.xlu1 %1107 }
 0x8d3   : > { %1913 = vrcp.f32 %v862_v40  ;;  %vm1109_vm14 = vcmp.gt.f32.partialorder %v1108_v9, 0.0 }
 0x8d9   : > { %v1912_v41 = vpop.eup %1911 }
 0x8da   : > { %v864_v42 = vmul.f32 %v1912_v41, %v855_v57 }
 0x8dc   : > { %1733 = vmatprep.mubr.msk.f32.mxu0 %vm617_vm2, %v864_v42 }
 0x8dd   : > { %v1914_v46 = vpop.eup %1913 }
 0x8de   : > { %v866_v48 = vmul.f32 %v1914_v46, %v856_v33 }
 0x8e0   : > { %1734 = vmatmul.mubr.msk.f32.vlgmr.msra.gmra.mrb[4].mxu0 %vm617_vm2, %v866_v48 }
 0x8e1   : > { %1830 = vmatpush3.bf16.msra.mxu0 %v1829_v47  ;;  %1747 = vmatprep.mubr.msk.f32.mxu0 %vm1980_vm0, %v1981_v6 }
 0x8e2   : > { %1837 = vmatprep.subr.bf16.mxu0 %v1979_v3 }
 0x9b3   : > { %v1735_v61 = vpop.f32.mrb[4].mxu0 }
 0x9b4   : > { %v939_v39 = vpop.f32.mrb[5].mxu0  ;;  %1741 = vmatmul.mubr.msk.f32.vlgmr.msra.gmra.mrb[4].mxu1 %vm617_vm2, %v1735_v61 }
 0x9b5   : > { %1748 = vmatmul.mubr.msk.f32.vlgmr.msra.gmra.mrb[6].mxu0 %vm617_vm2, %v939_v39  ;;  %1833 = vmatpush3.bf16.msra.mxu1 %v1832_v55 }
 0x9b6   : > { %1834 = vmatprep.subr.bf16.mxu1 %v1979_v3  ;;  %1758 = vmatprep.mubr.msk.f32.mxu1 %vm1980_vm0, %v1981_v6 }
 0x9b7   : > { %1765 = vmatprep.mubr.msk.f32.mxu0 %vm1980_vm0, %v1981_v6  ;;  %1839 = vmatpush3.bf16.msra.mxu0 %v1838_v2 }
 0x9b8   : > { %1840 = vmatprep.subr.bf16.mxu0 %v1979_v3 }
 0x9b9   : > { %1836 = vmatpush3.bf16.msra.mxu1 %v1835_v62 }
 0x9ba   : > { %1846 = vmatprep.subr.bf16.mxu1 %v1979_v3 }
 0x9bc   : > { %1759 = vmatmul.mubr.msk.f32.vlgmr.msra.gmra.mrb[6].mxu1 %vm379_vm1, %v1117_v63 }
 0x9bd   : > { %1783 = vmatprep.mubr.msk.f32.mxu1 %vm1980_vm0, %v1981_v6  ;;  %1848 = vmatpush3.bf16.msra.mxu1 %v1847_v7 }
 0x9be   : > { %1849 = vmatprep.subr.bf16.mxu1 %v1979_v3 }
 0xa87   : > { %v1021_v8 = vpop.f32.mrb[4].mxu1 }
 0xa88   : > { %v1742_v10 = vpop.f32.mrb[5].mxu1  ;;  %v1094_v13 = vpop.f32.mrb[6].mxu0 }
 0xa89   : > { %v1095_v16 = vadd.f32 %v1094_v13, %v1021_v8  ;;  %v1749_v17 = vpop.f32.mrb[7].mxu0 }
 0xa8b   : > { %v1102_v18 = vadd.f32 %v1626_v12, %v1095_v16 }
 0xa8d   : > { %v1112_v22 = vsel %vm1109_vm14, %v1102_v18, %v1103_v50 }
 0xa8e   : > { %1766 = vmatmul.mubr.msk.f32.vlgmr.msra.gmra.mrb[8].mxu0 %vm617_vm2, %v1112_v22 }
 0xa8f   : > { %1842 = vmatpush3.bf16.msra.mxu0 %v1841_v19  ;;  %v1191_v25 = vpop.f32.mrb[6].mxu1  ;;  %1776 = vmatprep.mubr.msk.f32.mxu0 %vm1980_vm0, %v1981_v6 }
 0xa90   : > { %1843 = vmatprep.subr.bf16.mxu0 %v1979_v3  ;;  %v1192_v26 = vadd.f32 %v1627_v23, %v1191_v25  ;;  %v1760_v27 = vpop.f32.mrb[7].mxu1 }
 0xa92   : > { %1784 = vmatmul.mubr.msk.f32.vlgmr.msra.gmra.mrb[8].mxu1 %vm617_vm2, %v1192_v26 }
 0xa93   : > { %1845 = vmatpush3.bf16.msra.mxu0 %v1844_v24  ;;  %1794 = vmatprep.mubr.msk.f32.mxu1 %vm1980_vm0, %v1981_v6  ;;  %v1429_v6 = vld [vmem:[%s2410_s7 + $0x18] sm:$0xff] }
 0xa94   : > { %1851 = vmatpush3.bf16.msra.mxu1 %v1850_v29 }
 0xa95   : > { %1852 = vmatprep.subr.bf16.mxu1 %v1979_v3  ;;  %v1632_v3 = vld [vmem:[%s2411_s8 + $0x4] ss:$0 sm:$0xff] }
 0xa96   : > { %1777 = vmatmul.mubr.msk.f32.vlgmr.msra.gmra.mrb[10].mxu0 %vm379_vm1, %v2117_v11  ;;  %v1853_v11 = vpack.c.bf16 %v1429_v6, %v1428_v38 }
 0xa98   : > { %1854 = vmatpush3.bf16.msra.mxu1 %v1853_v11 }
 0xb61   : > { %v1270_v30 = vpop.f32.mrb[8].mxu0 }
 0xb62   : > { %v1767_v31 = vpop.f32.mrb[9].mxu0 }
 0xb65   : > { %v1415_v56 = vpop.f32.mrb[8].mxu1 }
 0xb66   : > { %v1785_v57 = vpop.f32.mrb[9].mxu1 }
 0xb69   : > { %v1340_v58 = vpop.f32.mrb[10].mxu0 }
 0xb6a   : > { %v1341_v32 = vadd.f32 %v1340_v58, %v1270_v30  ;;  %v1778_v33 = vpop.f32.mrb[11].mxu0 }
 0xb6c   : > { %v1419_v34 = vadd.f32 %v1415_v56, %v1341_v32 }
 0xb6e   : > { %v1424_v35 = vadd.f32 %v1632_v3, %v1419_v34 }
 0xb70   : > { %v1425_v36 = vmax.f32 %v1424_v35, 0.0 }
 0xb72   : > { %1795 = vmatmul.mubr.msk.f32.vlgmr.msra.gmra.mrb[10].mxu1 %vm379_vm1, %v1425_v36 }
 0xc45   : > { %v1503_v44 = vpop.f32.mrb[10].mxu1 }
 0xc46   : > { %v1504_v40 = vadd.f32 %v1633_v37, %v1503_v44  ;;  %v1796_v41 = vpop.f32.mrb[11].mxu1 }
 0xc48   : > { %1507 = vst [vmem:[%s349_s25] sm:$0xff] %v1504_v40 }
 0xc49   : > { %1928 = shalt.err (!%p1925_p3)
}
 0xc4a   : > { %s1929_s16 = scalar_lea.hbm %s2361_s29, 128  ;;  %s1933_s25 = scalar_lea.hbm %s2412_s9, 256 }
 0xc4b   : > { %p1930_p4 = scmp.ne.s32.totalorder %s2361_s29, %s1929_s16  ;;  %p1934_p9 = scmp.lt.u32.totalorder %s2361_s29, %s2412_s9 }
 0xc4c   : > { %p1935_p10 = scmp.lt.u32.totalorder %s1933_s25, %s1929_s16  ;;  %p1937_p12 = scmp.lt.u32.totalorder %s1929_s16, %s2361_s29 }
 0xc4d   : > { %p1931_p7 = pnand %p1930_p4, %p2073_p5 }
 0xc4e   : > { %p1936_p11 = por %p1935_p10, %p1934_p9 }
 0xc4f   : > { %p1932_p8 = pneg %p1931_p7 }
 0xc50   : > { %p1938_p13 = por %p1937_p12, %p1936_p11 }
 0xc52   : > { %p1939_p0 = pnand %p1938_p13, %p1932_p8 }
 0xc54   : > { %1942 = shalt.err (!%p1939_p0)
}
 0xc55   : > { %1855 = dma.vmem_to_hbm [thread:$0]  (%p2073_p5), %s2363_s26, 128, %s2361_s29, %s1509_s22  }
 0xc56 PF: > { %p1861_p1 = scmp.ge.s32.totalorder %s1977_s12, 2  ;;  %s1534_s14 = sand.u32 1, %s1965_s30  }
 0xc57   : > { %s1535_s13 = scalar_lea.sflag [#allocation3], %s1534_s14 }
 0xc58   : > { %p1858_p2 = pnand %p1861_p1, %p2077_p6 }
 0xc5a   : > { %1960 = dma.done.wait (!%p1858_p2), %s1535_s13, 128  }
 0xc5b   : > { %1962 = vsyncadd (!%p1858_p2), %s1535_s13, 4294967168  ;;  %p19_p3 = scmp.ge.s32.totalorder %s2060_s15, 4   ;;  %s2419_s30 = smov %s1969_s10 }
 0xc5c   : > { %s2420_s10 = smov %s1973_s11  ;;  %s2421_s11 = smov %s2071_s18 }
 0xc5d   : > { %s2422_s12 = smov %s2060_s15  ;;  %21 = sbr.rel (!%p19_p3) target bundleno = 3 (0x3), region = 97 }
 0xc64   :  { %1540 = vsyncpa [#allocation3], 1 }
 0xc65   :  { %1542 = vsyncpa [#allocation3 + $0x1], 1 }

</bundles_post_ra>
